<compile_context>
chip_gen: v5e
topology: v5e:2x2
jax: 0.10.0
libtpu: 0.0.40
codegen_flags: <defaults>
</compile_context>

<pallas_src>
import math
import numpy as np

import jax
import jax.numpy as jnp
from jax.experimental import pallas as pl
from jax.experimental.pallas import tpu as pltpu


# -----------------------------------------------------------------------------
# Host-side (numpy) filterbank construction, mirroring
#   librosa.filters.mel(sample_rate, (n_stft-1)*2, htk=False, norm='slaney').T
# which is exactly what this module's __init__ puts in the `fb` buffer.
# (Note: this intentionally does NOT match stock torchaudio MelScale defaults
#  -- those are HTK scale / no norm -- because the given module uses librosa.)
# -----------------------------------------------------------------------------
def _hz_to_mel_slaney(freqs):
    freqs = np.asarray(freqs, dtype=np.float64)
    f_sp = 200.0 / 3.0
    mels = freqs / f_sp
    min_log_hz = 1000.0
    min_log_mel = min_log_hz / f_sp
    logstep = math.log(6.4) / 27.0
    log_region = freqs >= min_log_hz
    mels = np.where(
        log_region,
        min_log_mel + np.log(np.maximum(freqs, 1e-10) / min_log_hz) / logstep,
        mels,
    )
    return mels


def _mel_to_hz_slaney(mels):
    mels = np.asarray(mels, dtype=np.float64)
    f_sp = 200.0 / 3.0
    freqs = f_sp * mels
    min_log_hz = 1000.0
    min_log_mel = min_log_hz / f_sp
    logstep = math.log(6.4) / 27.0
    log_region = mels >= min_log_mel
    freqs = np.where(
        log_region, min_log_hz * np.exp(logstep * (mels - min_log_mel)), freqs
    )
    return freqs


def mel_filterbank_np(n_freqs, n_mels, sample_rate, f_min=0.0, f_max=None):
    """Slaney-scale, area-normalized mel filterbank. Returns (n_freqs, n_mels) f32."""
    if f_max is None:
        f_max = sample_rate / 2.0
    fftfreqs = np.linspace(0.0, sample_rate / 2.0, n_freqs, dtype=np.float64)
    mel_pts = np.linspace(
        _hz_to_mel_slaney(f_min), _hz_to_mel_slaney(f_max), n_mels + 2
    )
    f_pts = _mel_to_hz_slaney(mel_pts)                     # (n_mels + 2,)
    fdiff = np.diff(f_pts)                                 # (n_mels + 1,)
    ramps = f_pts[:, None] - fftfreqs[None, :]             # (n_mels + 2, n_freqs)
    lower = -ramps[:-2] / fdiff[:-1, None]
    upper = ramps[2:] / fdiff[1:, None]
    weights = np.maximum(0.0, np.minimum(lower, upper))    # (n_mels, n_freqs)
    enorm = 2.0 / (f_pts[2 : n_mels + 2] - f_pts[:n_mels]) # slaney area norm
    weights = weights * enorm[:, None]
    return weights.T.astype(np.float32)                    # (n_freqs, n_mels)


# -----------------------------------------------------------------------------
# Pallas kernel
# -----------------------------------------------------------------------------
def _mel_scale_kernel(fbT_ref, spec_ref, out_ref):
    # fbT_ref:  (n_mels, F)      -- untiled, VMEM-resident across all grid steps
    # spec_ref: (Bb, F, Tt)      -- one (batch-block, time-block) tile
    # out_ref:  (Bb, n_mels, Tt)
    fbT = fbT_ref[...]
    for b in range(spec_ref.shape[0]):  # Bb small, static unroll -> Bb MXU dots
        out_ref[b] = jnp.dot(
            fbT, spec_ref[b], preferred_element_type=jnp.float32
        ).astype(out_ref.dtype)


def mel_scale_forward(specgram, fb, *, batch_block=8, time_block=1024,
                      compute_dtype=None):
    """specgram: (..., freq, time); fb: (n_freqs, n_mels) -> (..., n_mels, time).

    batch_block/time_block: per-grid-step tile sizes.  Defaults (8, 1024) keep
    the double-buffered footprint ~7 MB (safe for v5e's 16 MiB scoped VMEM);
    on v6e/v7x a larger batch_block (16-32, when B allows) amortizes per-step
    overhead further without raising per-matmul vreg pressure.
    compute_dtype: optional explicit ingest dtype (e.g. jnp.bfloat16) to halve
    HBM read traffic; accumulation stays f32 and the output keeps specgram's
    dtype.  fb itself is never silently downcast.
    """
    orig_shape = specgram.shape
    F, T = orig_shape[-2], orig_shape[-1]
    fb = jnp.asarray(fb)                                   # stays float32
    n_mels = fb.shape[1]
    out_dtype = specgram.dtype

    spec3 = specgram.reshape(-1, F, T)
    B = spec3.shape[0]

    if compute_dtype is not None:
        spec3 = spec3.astype(compute_dtype)
        fbT = fb.T.astype(compute_dtype)                   # explicit, opt-in cast
    else:
        fbT = fb.T                                         # (n_mels, F), float32

    # Tiny time axis: masked partial stores + a single overhead-dominated grid
    # step -- the fused XLA einsum is strictly better.  Keep semantics identical.
    if T < 128:
        mel = jnp.einsum(
            "bft,mf->bmt", spec3, fbT, preferred_element_type=jnp.float32
        ).astype(out_dtype)
        return mel.reshape(orig_shape[:-2] + (n_mels, T))

    # Lane-dense time tile: full T when it fits, else a multiple-of-128 block.
    Tt = min(time_block, T)
    Bb = min(batch_block, B)

    # v7x megacore: make sure at least one "parallel" axis has >= 2 blocks so
    # both TensorCores get work (no-op on single-TC v5e/v6e).
    if pl.cdiv(B, Bb) == 1 and pl.cdiv(T, Tt) == 1:
        if B >= 2:
            Bb = pl.cdiv(B, 2)
        elif T >= 256:
            Tt = max(128, (T // 2 // 128) * 128)

    grid = (pl.cdiv(B, Bb), pl.cdiv(T, Tt))  # time last = contiguous DMA stream

    out = pl.pallas_call(
        _mel_scale_kernel,
        out_shape=jax.ShapeDtypeStruct((B, n_mels, T), out_dtype),
        grid_spec=pl.GridSpec(
            grid=grid,
            in_specs=[
                # Constant filterbank: whole array resident in VMEM, not pipelined.
                pl.BlockSpec(memory_space=pltpu.MemorySpace.VMEM),
                pl.BlockSpec((Bb, F, Tt), lambda i, j: (i, 0, j)),
            ],
            out_specs=pl.BlockSpec((Bb, n_mels, Tt), lambda i, j: (i, 0, j)),
        ),
        compiler_params=pltpu.CompilerParams(
            dimension_semantics=("parallel", "parallel"),
        ),
    )(fbT, spec3)

    return out.reshape(orig_shape[:-2] + (n_mels, T))


if __name__ == "__main__":
    # Module-consistent small shapes that still exercise the Pallas path:
    #   n_stft = 65 (n_fft = 128), n_mels = 32, sample_rate = 24000
    #   input spectrogram: (batch=2, channel=2, freq=65, time=256)
    n_stft = 65
    n_mels = 32
    sample_rate = 24000

    fb = jnp.asarray(mel_filterbank_np(n_stft, n_mels, sample_rate))  # (65, 32)

    key = jax.random.PRNGKey(0)
    spec = jax.random.uniform(key, (2, 2, n_stft, 256), dtype=jnp.float32)

    mel = mel_scale_forward(spec, fb)
    jax.block_until_ready(mel)

    # Reference mirroring the PyTorch matmul/transpose path.
    ref = jnp.einsum("bcft,fm->bcmt", spec, fb)
    assert mel.shape == (2, 2, n_mels, 256)
    assert jnp.allclose(mel, ref, atol=1e-4, rtol=1e-4)

    print("KERNEL_OK")
</pallas_src>

<mosaic_0001>
module attributes {stable_mosaic.version = 11 : i64} {
  func.func @_mel_scale_kernel(%arg0: i32, %arg1: i32, %arg2: memref<32x65xf32, #tpu.memory_space<vmem>>, %arg3: memref<2x65x256xf32, #tpu.memory_space<vmem>>, %arg4: memref<2x32x256xf32, #tpu.memory_space<vmem>>) attributes {dimension_semantics = [#tpu.dimension_semantics<parallel>, #tpu.dimension_semantics<parallel>], iteration_bounds = array<i64: 2, 1>, scalar_prefetch = 0 : i64, scratch_operands = 0 : i64, tpu.core_type = #tpu.core_type<tc>, window_params = [{pipeline_mode = #tpu.pipeline_mode<synchronous>, transform_indices = @transform_0, window_bounds = array<i64: 32, 65>}, {transform_indices = @transform_1, window_bounds = array<i64: 2, 65, 256>}, {transform_indices = @transform_2, window_bounds = array<i64: 2, 32, 256>}]} {
    %c0 = arith.constant 0 : index
    %c0_0 = arith.constant 0 : index
    %0 = vector.load %arg2[%c0, %c0_0] : memref<32x65xf32, #tpu.memory_space<vmem>>, vector<32x65xf32>
    %c0_1 = arith.constant 0 : index
    %c0_2 = arith.constant 0 : index
    %c0_3 = arith.constant 0 : index
    %1 = vector.load %arg3[%c0_1, %c0_2, %c0_3] : memref<2x65x256xf32, #tpu.memory_space<vmem>>, vector<1x65x256xf32>
    %2 = vector.shape_cast %1 : vector<1x65x256xf32> to vector<65x256xf32>
    %cst = arith.constant dense<0.000000e+00> : vector<32x256xf32>
    %3 = tpu.matmul %0, %2, %cst {dimension_numbers = #tpu.dot_dimension_numbers<[1], [0], [0], [1], [0, 0, 1, 1], [], []>} : vector<32x65xf32>, vector<65x256xf32>, vector<32x256xf32> -> vector<32x256xf32>
    %c0_4 = arith.constant 0 : index
    %c0_5 = arith.constant 0 : index
    %c0_6 = arith.constant 0 : index
    %4 = vector.load %arg4[%c0_4, %c0_5, %c0_6] : memref<2x32x256xf32, #tpu.memory_space<vmem>>, vector<1x32x256xf32>
    %5 = vector.shape_cast %4 : vector<1x32x256xf32> to vector<32x256xf32>
    %6 = vector.shape_cast %3 : vector<32x256xf32> to vector<1x32x256xf32>
    tpu.vector_store %arg4[%c0_4, %c0_5, %c0_6], %6 {strides = array<i32>} : memref<2x32x256xf32, #tpu.memory_space<vmem>>, vector<1x32x256xf32>,
    %c1 = arith.constant 1 : index
    %c0_7 = arith.constant 0 : index
    %c0_8 = arith.constant 0 : index
    %7 = vector.load %arg3[%c1, %c0_7, %c0_8] : memref<2x65x256xf32, #tpu.memory_space<vmem>>, vector<1x65x256xf32>
    %8 = vector.shape_cast %7 : vector<1x65x256xf32> to vector<65x256xf32>
    %cst_9 = arith.constant dense<0.000000e+00> : vector<32x256xf32>
    %9 = tpu.matmul %0, %8, %cst_9 {dimension_numbers = #tpu.dot_dimension_numbers<[1], [0], [0], [1], [0, 0, 1, 1], [], []>} : vector<32x65xf32>, vector<65x256xf32>, vector<32x256xf32> -> vector<32x256xf32>
    %c1_10 = arith.constant 1 : index
    %c0_11 = arith.constant 0 : index
    %c0_12 = arith.constant 0 : index
    %10 = vector.load %arg4[%c1_10, %c0_11, %c0_12] : memref<2x32x256xf32, #tpu.memory_space<vmem>>, vector<1x32x256xf32>
    %11 = vector.shape_cast %10 : vector<1x32x256xf32> to vector<32x256xf32>
    %12 = vector.shape_cast %9 : vector<32x256xf32> to vector<1x32x256xf32>
    tpu.vector_store %arg4[%c1_10, %c0_11, %c0_12], %12 {strides = array<i32>} : memref<2x32x256xf32, #tpu.memory_space<vmem>>, vector<1x32x256xf32>,
    return
  }
  func.func @transform_0(%arg0: i32, %arg1: i32) -> (i32, i32) {
    %c0_i32 = arith.constant 0 : i32
    %c0_i32_0 = arith.constant 0 : i32
    %c0_i32_1 = arith.constant 0 : i32
    return %c0_i32, %c0_i32_0 : i32, i32
  }
  func.func @transform_1(%arg0: i32, %arg1: i32) -> (i32, i32, i32) {
    %c0_i32 = arith.constant 0 : i32
    %c0_i32_0 = arith.constant 0 : i32
    return %arg0, %c0_i32, %arg1 : i32, i32, i32
  }
  func.func @transform_2(%arg0: i32, %arg1: i32) -> (i32, i32, i32) {
    %c0_i32 = arith.constant 0 : i32
    %c0_i32_0 = arith.constant 0 : i32
    return %arg0, %c0_i32, %arg1 : i32, i32, i32
  }
}

</mosaic_0001>

<bundles_post_ra>
// kernel: tpu_custom_call.1
= control target key start
LH: loop header
LB: loop body
LE: loop exit
PB: predicated region body
PF: predicated region fallthrough
CT: control target
= control target key end

     0   :  { %7 = vsyncpa [#allocation3], 0  ;;  %s883_s0 = inlined_call_operand.vmem [shape: f32[32,65], index: 0, kind: input, shape index: {}]   ;;  %s884_s1 = inlined_call_operand.vmem [shape: f32[4,65,256], index: 1, kind: input, shape index: {}]   ;;  %s885_s2 = inlined_call_operand.hbm [shape: f32[4,32,256], index: 2, kind: output, shape index: {}]  }
   0x1   :  { %9 = vsyncpa [#allocation3 + $0x1], 0  ;;  %s694_s9 = smov 0   ;;  %s696_s10 = smov 0  }
   0x2   :  { %s698_s11 = smov 0   ;;  %s700_s12 = smov 0  }
   0x3   :  { %s702_s13 = smov 0   ;;  %s704_s14 = smov 0  }
   0x4 LB: > { %s477_s15 = sadd.s32 4294967295, %s675_s14   ;;  %s478_s16 = sadd.s32 4294967294, %s675_s14   ;;  %s675_s14 = sphi %s704_s14, %s15_s14   ;;  %s671_s13 = sphi %s702_s13, %s892_s13   ;;  %s667_s12 = sphi %s700_s12, %s891_s12   ;;  %s663_s11 = sphi %s698_s11, %s890_s11   ;;  %s659_s10 = sphi %s696_s10, %s889_s10   ;;  %s655_s9 = sphi %s694_s9, %s888_s9  }
   0x5   : > { %s27_s17 = sadd.s32 1, %s671_s13  ;;  %s85_s18 = sadd.s32 1, %s663_s11 }
   0x6   : > { %p29_p0 = scmp.ge.s32.totalorder %s27_s17, 2  ;;  %p95_p1 = scmp.ne.s32.totalorder %s663_s11, %s659_s10 }
   0x7   : > { %p96_p2 = scmp.eq.s32.totalorder %s477_s15, 1  ;;  %p101_p3 = scmp.ne.s32.totalorder %s659_s10, %s655_s9 }
   0x8   : > { %s894_s17 = smov (%p29_p0, %s27_s17), 0  ;;  %p102_p5 = scmp.eq.s32.totalorder %s478_s16, 1 }
   0x9   : > { %p734_p4 = por %p96_p2, %p95_p1  ;;  %s80_s20 = ssub.s32 %s671_s13, %s894_s17 }
   0xa   : > { %p481_p6 = scmp.ge.s32.totalorder %s675_s14, 1  ;;  %p83_p7 = scmp.eq.s32.totalorder %s80_s20, 0 }
   0xb   : > { %p741_p8 = por %p102_p5, %p101_p3  ;;  %p138_p9 = scmp.lt.s32.totalorder %s675_s14, 3 }
   0xc   : > { %s747_s22 = scalar_select %p83_p7, %s663_s11, %s85_s18  }
   0xd   : > { %p139_p10 = pnand %p481_p6, %p138_p9 }
   0xe   : > { %s483_s23 = sshll.u32 (!%p139_p10), %s667_s12, 1  ;;  %s162_s8 = sand.u32 (!%p139_p10), 1, %s659_s10  }
   0xf   : > { %142 = sbr.rel (%p139_p10) target bundleno = 203 (0xcb), region = 28  ;;  %p167_p11 = scmp.lt.s32.totalorder (!%p139_p10), %s483_s23, 3 }
  0x10   : > { %s482_s15 = sshll.u32 (!%p139_p10), %s162_s8, 7  ;;  %s538_s18 = sshll.u32 (!%p139_p10), %s667_s12, 7 }
  0x11   : > { %s826_s16 = scalar_lea.vmem (!%p139_p10), [#allocation2], %s482_s15  ;;  %s380_s12 = scalar_lea.sflag (!%p139_p10), [#allocation3], %s162_s8 }
  0x12   : > { %s395_s25 = sshll.u32 (!%p139_p10), %s826_s16, 4  ;;  %s617_s3 = scalar_lea.hbm (!%p139_p10), %s885_s2, 256  ;;  %s396_s25 = int_to_ptr.vmem [resolvable:$true] %s395_s25 }
  0x14   : > { %s896_s23 = smov (!%p167_p11, %s483_s23), 3  ;;  %vm214_vm0 = vcmask 1040384   ;;  %v179_v32 = vld [vmem:[%s883_s0] sm:$0xff]  ;;  %vm201_vm1 = vcmask 531456   ;;  %v180_v37 = vld [vmem:[%s883_s0 + $0x8] sm:$0xff]  ;;  %v181_v38 = vld [vmem:[%s883_s0 + $0x10] sm:$0xff] }
  0x15   : > { %s539_s24 = smul.u32 144, %s896_s23  ;;  %v182_v39 = vld [vmem:[%s883_s0 + $0x18] sm:$0xff] }
  0x17   : > { %s753_s27 = scalar_lea.vmem %s884_s1, %s539_s24  ;;  %s394_s24 = scalar_lea.hbm %s885_s2, %s538_s18 }
  0x18   : > { %v511_v0 = vld [vmem:[%s753_s27 + $0x110] sm:$0x1]  ;;  %v512_v1 = vld [vmem:[%s753_s27 + $0x118] sm:$0x1]  ;;  %v509_v2 = vld [vmem:[%s753_s27 + $0x100] sm:$0xff]  ;;  %s397_s26 = sshll.u32 %s394_s24, 4  ;;  %s398_s26 = int_to_ptr.hbm [resolvable:$true] %s397_s26 }
  0x19   : > { %513 = vmatpush.msk.msra.mxu2 %vm214_vm0, %v511_v0  ;;  %518 = vmatpush.msk.msra.mxu3 %vm214_vm0, %v512_v1  ;;  %v510_v3 = vld [vmem:[%s753_s27 + $0x108] sm:$0xff]  ;;  %v507_v4 = vld [vmem:[%s753_s27 + $0xf0] sm:$0xff]  ;;  %v508_v5 = vld [vmem:[%s753_s27 + $0xf8] sm:$0xff] }
  0x1a   : > { %v199_v6 = vld [vmem:[%s753_s27 + $0x80] sm:$0x1]  ;;  %v200_v7 = vld [vmem:[%s753_s27 + $0x88] sm:$0x1]  ;;  %v197_v8 = vld [vmem:[%s753_s27 + $0x70] sm:$0xff] }
  0x1b   : > { %320 = vmatpush.msra.mxu2 %v509_v2  ;;  %349 = vmatpush.msra.mxu3 %v510_v3  ;;  %v198_v9 = vld [vmem:[%s753_s27 + $0x78] sm:$0xff]  ;;  %v505_v10 = vld [vmem:[%s753_s27 + $0xe0] sm:$0xff]  ;;  %v506_v11 = vld [vmem:[%s753_s27 + $0xe8] sm:$0xff] }
  0x1c   : > { %485 = vmatpush.msk.msra.mxu0 %vm214_vm0, %v199_v6  ;;  %490 = vmatpush.msk.msra.mxu1 %vm214_vm0, %v200_v7  ;;  %v195_v12 = vld [vmem:[%s753_s27 + $0x60] sm:$0xff]  ;;  %v196_v13 = vld [vmem:[%s753_s27 + $0x68] sm:$0xff]  ;;  %v503_v14 = vld [vmem:[%s753_s27 + $0xd0] sm:$0xff] }
  0x1d   : > { %321 = vmatpush.msra.mxu2 %v507_v4  ;;  %350 = vmatpush.msra.mxu3 %v508_v5  ;;  %v504_v15 = vld [vmem:[%s753_s27 + $0xd8] sm:$0xff]  ;;  %v193_v16 = vld [vmem:[%s753_s27 + $0x50] sm:$0xff]  ;;  %v501_v18 = vld [vmem:[%s753_s27 + $0xc0] sm:$0xff] }
  0x1e   : > { %229 = vmatpush.msra.mxu0 %v197_v8  ;;  %258 = vmatpush.msra.mxu1 %v198_v9  ;;  %v194_v17 = vld [vmem:[%s753_s27 + $0x58] sm:$0xff]  ;;  %v502_v19 = vld [vmem:[%s753_s27 + $0xc8] sm:$0xff]  ;;  %v191_v20 = vld [vmem:[%s753_s27 + $0x40] sm:$0xff] }
  0x1f   : > { %322 = vmatpush.msra.mxu2 %v505_v10  ;;  %351 = vmatpush.msra.mxu3 %v506_v11  ;;  %v192_v21 = vld [vmem:[%s753_s27 + $0x48] sm:$0xff]  ;;  %v499_v22 = vld [vmem:[%s753_s27 + $0xb0] sm:$0xff]  ;;  %v500_v23 = vld [vmem:[%s753_s27 + $0xb8] sm:$0xff] }
  0x20   : > { %230 = vmatpush.msra.mxu0 %v195_v12  ;;  %259 = vmatpush.msra.mxu1 %v196_v13  ;;  %v189_v24 = vld [vmem:[%s753_s27 + $0x30] sm:$0xff]  ;;  %v190_v25 = vld [vmem:[%s753_s27 + $0x38] sm:$0xff]  ;;  %v497_v26 = vld [vmem:[%s753_s27 + $0xa0] sm:$0xff] }
  0x21   : > { %323 = vmatpush.msra.mxu2 %v503_v14  ;;  %352 = vmatpush.msra.mxu3 %v504_v15  ;;  %v498_v27 = vld [vmem:[%s753_s27 + $0xa8] sm:$0xff]  ;;  %v187_v28 = vld [vmem:[%s753_s27 + $0x20] sm:$0xff]  ;;  %v495_v30 = vld [vmem:[%s753_s27 + $0x90] sm:$0xff] }
  0x22   : > { %231 = vmatpush.msra.mxu0 %v193_v16  ;;  %260 = vmatpush.msra.mxu1 %v194_v17  ;;  %v188_v29 = vld [vmem:[%s753_s27 + $0x28] sm:$0xff]  ;;  %v496_v31 = vld [vmem:[%s753_s27 + $0x98] sm:$0xff]  ;;  %v185_v33 = vld [vmem:[%s753_s27 + $0x10] sm:$0xff] }
  0x23   : > { %324 = vmatpush.msra.mxu2 %v501_v18  ;;  %353 = vmatpush.msra.mxu3 %v502_v19  ;;  %v186_v34 = vld [vmem:[%s753_s27 + $0x18] sm:$0xff]  ;;  %v183_v35 = vld [vmem:[%s753_s27] sm:$0xff]  ;;  %v184_v36 = vld [vmem:[%s753_s27 + $0x8] sm:$0xff]  ;;  %s611_s27 = sshra.s32 %s398_s26, 4  ;;  %s612_s27 = int_to_ptr.hbm [resolvable:$true] %s611_s27 }
  0x24   : > { %232 = vmatpush.msra.mxu0 %v191_v20  ;;  %261 = vmatpush.msra.mxu1 %v192_v21  ;;  %s613_s28 = scalar_lea.hbm %s612_s27, 128  ;;  %p618_p1 = scmp.lt.s32.totalorder %s612_s27, %s885_s2 }
  0x25   : > { %325 = vmatpush.msra.mxu2 %v499_v22  ;;  %354 = vmatpush.msra.mxu3 %v500_v23  ;;  %p614_p12 = scmp.ne.s32.totalorder %s612_s27, %s613_s28  ;;  %p619_p2 = scmp.lt.s32.totalorder %s617_s3, %s613_s28 }
  0x26   : > { %233 = vmatpush.msra.mxu0 %v189_v24  ;;  %262 = vmatpush.msra.mxu1 %v190_v25 }
  0x27   : > { %326 = vmatpush.msra.mxu2 %v497_v26  ;;  %355 = vmatpush.msra.mxu3 %v498_v27  ;;  %p615_p13 = pnand %p614_p12, %p734_p4  ;;  %p620_p3 = por %p619_p2, %p618_p1 }
  0x28   : > { %234 = vmatpush.msra.mxu0 %v187_v28  ;;  %263 = vmatpush.msra.mxu1 %v188_v29 }
  0x29   : > { %327 = vmatpush.msra.mxu2 %v495_v30  ;;  %356 = vmatpush.msra.mxu3 %v496_v31  ;;  %p616_p0 = pneg %p615_p13 }
  0x2a   : > { %514 = vmatmul.msk.f32.vlgmr.msra.gmra.mxu2 %vm201_vm1, %v179_v32  ;;  %519 = vmatmul.msk.f32.vlgmr.msra.gmra.mxu3 %vm201_vm1, %v179_v32 }
  0x2b   : > { %235 = vmatpush.msra.mxu0 %v185_v33  ;;  %264 = vmatpush.msra.mxu1 %v186_v34  ;;  %p621_p5 = pnand %p620_p3, %p616_p0 }
  0x2d   : > { %236 = vmatpush.msra.mxu0 %v183_v35  ;;  %265 = vmatpush.msra.mxu1 %v184_v36 }
  0x2e   : > { %486 = vmatmul.msk.f32.vlgmr.msra.gmra.mxu0 %vm201_vm1, %v179_v32  ;;  %491 = vmatmul.msk.f32.vlgmr.msra.gmra.mxu1 %vm201_vm1, %v179_v32 }
  0x32   : > { %515 = vmatmul.msk.f32.gmra.mxu2 %vm201_vm1, %v180_v37  ;;  %520 = vmatmul.msk.f32.gmra.mxu3 %vm201_vm1, %v180_v37 }
  0x36   : > { %487 = vmatmul.msk.f32.gmra.mxu0 %vm201_vm1, %v180_v37  ;;  %492 = vmatmul.msk.f32.gmra.mxu1 %vm201_vm1, %v180_v37 }
  0x3a   : > { %516 = vmatmul.msk.f32.gmra.mxu2 %vm201_vm1, %v181_v38  ;;  %521 = vmatmul.msk.f32.gmra.mxu3 %vm201_vm1, %v181_v38 }
  0x3e   : > { %488 = vmatmul.msk.f32.gmra.mxu0 %vm201_vm1, %v181_v38  ;;  %493 = vmatmul.msk.f32.gmra.mxu1 %vm201_vm1, %v181_v38 }
  0x42   : > { %517 = vmatmul.msk.f32.gmra.mxu2 %vm201_vm1, %v182_v39  ;;  %522 = vmatmul.msk.f32.gmra.mxu3 %vm201_vm1, %v182_v39 }
  0x46   : > { %489 = vmatmul.msk.f32.gmra.mxu0 %vm201_vm1, %v182_v39  ;;  %494 = vmatmul.msk.f32.gmra.mxu1 %vm201_vm1, %v182_v39 }
  0xab   : > { %v238_v40 = vpop.f32.mrf.mxu0  ;;  %v267_v41 = vpop.f32.mrf.mxu1 }
  0xac   : > { %279 = vst [vmem:[%s826_s16] sm:$0xff] %v238_v40 }
  0xad   : > { %280 = vst [vmem:[%s826_s16 + $0x8] sm:$0xff] %v267_v41  ;;  %v329_v42 = vpop.f32.mrf.mxu2  ;;  %v358_v43 = vpop.f32.mrf.mxu3 }
  0xae   : > { %523 = vst [vmem:[%s826_s16 + $0x40] sm:$0xff] %v329_v42 }
  0xaf   : > { %524 = vst [vmem:[%s826_s16 + $0x48] sm:$0xff] %v358_v43 }
  0xb3   : > { %v241_v44 = vpop.f32.mrf.mxu0  ;;  %v270_v45 = vpop.f32.mrf.mxu1 }
  0xb4   : > { %281 = vst [vmem:[%s826_s16 + $0x10] sm:$0xff] %v241_v44 }
  0xb5   : > { %282 = vst [vmem:[%s826_s16 + $0x18] sm:$0xff] %v270_v45  ;;  %v332_v46 = vpop.f32.mrf.mxu2  ;;  %v361_v47 = vpop.f32.mrf.mxu3 }
  0xb6   : > { %525 = vst [vmem:[%s826_s16 + $0x50] sm:$0xff] %v332_v46 }
  0xb7   : > { %526 = vst [vmem:[%s826_s16 + $0x58] sm:$0xff] %v361_v47 }
  0xbb   : > { %v244_v48 = vpop.f32.mrf.mxu0  ;;  %v273_v49 = vpop.f32.mrf.mxu1 }
  0xbc   : > { %283 = vst [vmem:[%s826_s16 + $0x20] sm:$0xff] %v244_v48 }
  0xbd   : > { %284 = vst [vmem:[%s826_s16 + $0x28] sm:$0xff] %v273_v49  ;;  %v335_v50 = vpop.f32.mrf.mxu2  ;;  %v364_v51 = vpop.f32.mrf.mxu3 }
  0xbe   : > { %527 = vst [vmem:[%s826_s16 + $0x60] sm:$0xff] %v335_v50 }
  0xbf   : > { %528 = vst [vmem:[%s826_s16 + $0x68] sm:$0xff] %v364_v51 }
  0xc3   : > { %v247_v52 = vpop.f32.mrf.mxu0  ;;  %v276_v53 = vpop.f32.mrf.mxu1 }
  0xc4   : > { %285 = vst [vmem:[%s826_s16 + $0x30] sm:$0xff] %v247_v52 }
  0xc5   : > { %286 = vst [vmem:[%s826_s16 + $0x38] sm:$0xff] %v276_v53  ;;  %v338_v54 = vpop.f32.mrf.mxu2  ;;  %v367_v55 = vpop.f32.mrf.mxu3 }
  0xc6   : > { %529 = vst [vmem:[%s826_s16 + $0x70] sm:$0xff] %v338_v54 }
  0xc7   : > { %530 = vst [vmem:[%s826_s16 + $0x78] sm:$0xff] %v367_v55 }
  0xc8   : > { %624 = shalt.err (!%p621_p5)
}
  0xc9   : > { %s677_s6 = smov 256   ;;  %s678_s7 = smov 16  }
  0xca   : > { %540 = dma.vmem_to_hbm [thread:$0]  (%p734_p4), %s396_s25, 2048, %s398_s26, %s380_s12, %s677_s6, %s677_s6, %s678_s7  }
  0xcb PF: > { %p546_p6 = scmp.ge.s32.totalorder %s675_s14, 2  ;;  %s412_s8 = sand.u32 1, %s655_s9  }
  0xcc   : > { %s413_s15 = scalar_lea.sflag [#allocation3], %s412_s8 }
  0xcd   : > { %p543_p7 = pnand %p546_p6, %p741_p8 }
  0xcf   : > { %p544_p9 = pneg %p543_p7 }
  0xd1   : > { %650 = dma.done.wait (%p544_p9), %s413_s15, 2048  }
  0xd2   : > { %652 = vsyncadd (%p544_p9), %s413_s15, 4294965248  ;;  %s15_s14 = sadd.s32 1, %s675_s14   ;;  %s888_s9 = smov %s659_s10 }
  0xd3   : > { %p12_p10 = scmp.ge.s32.totalorder %s15_s14, 4   ;;  %s889_s10 = smov %s663_s11 }
  0xd4   : > { %s890_s11 = smov %s747_s22  ;;  %s891_s12 = smov %s671_s13 }
  0xd5   : > { %s892_s13 = smov %s894_s17  ;;  %14 = sbr.rel (!%p12_p10) target bundleno = 4 (0x4), region = 65 }
  0xda   :  { %419 = vsyncpa [#allocation3], 1 }
  0xdb   :  { %421 = vsyncpa [#allocation3 + $0x1], 1 }

</bundles_post_ra>
